<compile_context>
chip_gen: v5e
topology: v5e:2x2
jax: 0.10.0
libtpu: 0.0.40
codegen_flags: <defaults>
</compile_context>

<pallas_src>
import functools

import jax
import jax.numpy as jnp
import numpy as np
from jax.experimental import pallas as pl
from jax.experimental.pallas import tpu as pltpu

# Full-precision f32 matmuls so the f32 demo below matches the pure-JAX
# reference.  This only affects f32 operands: bf16 operands are a single
# native MXU pass regardless, so the production bf16 path is unaffected.
jax.config.update("jax_default_matmul_precision", "highest")

_LN_EPS = 1e-5                          # torch nn.LayerNorm default


def _vmem_limit_bytes():
    cap = 64 * 1024 * 1024              # conservative fallback (v7x physical)
    try:
        cap = int(getattr(pltpu.get_tpu_info(), "vmem_capacity_bytes", cap))
    except Exception:
        pass
    return int(cap * 3 // 4)            # ~96 MiB on v5e/v6e, ~48 MiB on v7x


_VMEM_LIMIT_BYTES = _vmem_limit_bytes()
_TILE_VMEM_BUDGET = max(_VMEM_LIMIT_BYTES * 3 // 5, 16 * 1024 * 1024)


def _compiler_params(sem):
    return pltpu.CompilerParams(dimension_semantics=sem,
                                vmem_limit_bytes=_VMEM_LIMIT_BYTES)


# --------------------------------------------------------------------------
# helpers
# --------------------------------------------------------------------------
def _round_up(x, m):
    return (x + m - 1) // m * m


def _choose_tile_rows(rows, per_row_bytes, resident_bytes,
                      budget=None, min_steps=2, max_tile=2048):
    """Largest row tile (multiple of 8) that fits the VMEM budget, accounting
    for double-buffering of both streamed AND grid-invariant blocks, and
    keeping >= min_steps grid steps so both v7x TensorCores get work."""
    if budget is None:
        budget = _TILE_VMEM_BUDGET
    avail = max(budget - 2 * resident_bytes, 1 << 20)
    t = int(avail // max(2 * per_row_bytes, 1))
    t = max(8, min(t, max_tile))
    t = min(t, max(8, _round_up(-(-rows // min_steps), 8)))
    t = max(8, (t // 8) * 8)
    return t


def _largest_divisor_leq(n, cap):
    cap = max(1, min(n, cap))
    for d in range(cap, 0, -1):
        if n % d == 0:
            return d
    return 1


def _choose_kv_tile(skv, cap=512):
    """KV tile: a multiple of 8 that divides Skv (or full Skv, always legal)."""
    if skv <= cap:
        return skv
    for t in range(cap, 7, -1):
        if skv % t == 0 and t % 8 == 0:
            return t
    return skv


def _choose_inner_tile(D, inner, Dout, w_elem_bytes, budget=8 * 1024 * 1024):
    """Inner (4*dim) tile for the GEGLU FF: multiple of 128 dividing `inner`
    whose per-tile weight slabs stay under `budget` bytes."""
    if inner % 128 != 0:
        return inner
    per_unit = (2 * D + Dout) * w_elem_bytes
    max_it = max(128, budget // max(per_unit, 1))
    it = max(128, (min(inner, max_it) // 128) * 128)
    while it > 128 and inner % it != 0:
        it -= 128
    if inner % it != 0:
        it = inner
    return it


def _erf_approx(z):
    # Abramowitz & Stegun 7.1.26, |err| < 1.5e-7.  Exact-GELU semantics using
    # only exp / mul / add / where inside Mosaic.
    a1, a2, a3, a4, a5 = (0.254829592, -0.284496736, 1.421413741,
                          -1.453152027, 1.061405429)
    p = 0.3275911
    az = jnp.abs(z)
    t = 1.0 / (1.0 + p * az)
    poly = t * (a1 + t * (a2 + t * (a3 + t * (a4 + t * a5))))
    y = 1.0 - poly * jnp.exp(-(az * az))
    return jnp.where(z >= 0.0, y, -y)


def _gelu_exact(x):
    return 0.5 * x * (1.0 + _erf_approx(x * 0.7071067811865476))


# --------------------------------------------------------------------------
# kernels
# --------------------------------------------------------------------------
def _make_fused_proj_kernel(n_out, apply_ln, eps):
    """(optional LN(x)*mul+add) followed by n_out bias-free projections,
    all from a single read of the x row slab."""
    def kernel(*refs):
        off = 2 if apply_ln else 0
        w_refs = refs[off:off + n_out]
        x_ref = refs[off + n_out]
        o_refs = refs[off + n_out + 1:]
        x = x_ref[...]
        if apply_ln:
            mul = refs[0][...].astype(jnp.float32)
            add = refs[1][...].astype(jnp.float32)
            xf = x.astype(jnp.float32)
            mean = jnp.mean(xf, axis=-1, keepdims=True)
            xc = xf - mean
            var = jnp.mean(xc * xc, axis=-1, keepdims=True)
            x = (xc * jax.lax.rsqrt(var + eps) * mul + add).astype(x_ref.dtype)
        for w_ref, o_ref in zip(w_refs, o_refs):
            o_ref[...] = jnp.dot(
                x, w_ref[...], preferred_element_type=jnp.float32
            ).astype(o_ref.dtype)
    return kernel


def _flash_attn_kernel(q_ref, k_ref, v_ref, o_ref, m_ref, l_ref, acc_ref, *, scale):
    """Online-softmax attention over a block of (batch*head) slices; the KV
    grid axis (last) is the reduction axis."""
    kv = pl.program_id(2)

    @pl.when(kv == 0)
    def _():
        m_ref[...] = jnp.full(m_ref.shape, -jnp.inf, jnp.float32)
        l_ref[...] = jnp.zeros(l_ref.shape, jnp.float32)
        acc_ref[...] = jnp.zeros(acc_ref.shape, jnp.float32)

    q = q_ref[...] * scale                            # fold scale into q: O(tq*Dh)
    s = jnp.einsum('bqd,bkd->bqk', q, k_ref[...],
                   preferred_element_type=jnp.float32)
    m_prev = m_ref[...]
    m_new = jnp.maximum(m_prev, jnp.max(s, axis=-1, keepdims=True))
    alpha = jnp.exp(m_prev - m_new)
    p = jnp.exp(s - m_new)
    l_ref[...] = alpha * l_ref[...] + jnp.sum(p, axis=-1, keepdims=True)
    acc_ref[...] = alpha * acc_ref[...] + jnp.einsum(
        'bqk,bkd->bqd', p.astype(v_ref.dtype), v_ref[...],
        preferred_element_type=jnp.float32)
    m_ref[...] = m_new

    @pl.when(kv == pl.num_programs(2) - 1)
    def _():
        o_ref[...] = (acc_ref[...] * pl.reciprocal(l_ref[...], approx=True)
                      ).astype(o_ref.dtype)


def _out_residual_kernel(w_ref, b_ref, x_ref, res_ref, o_ref):
    """to_out projection fused with bias and residual add."""
    y = jnp.dot(x_ref[...], w_ref[...], preferred_element_type=jnp.float32)
    y = y + b_ref[...].astype(jnp.float32) + res_ref[...].astype(jnp.float32)
    o_ref[...] = y.astype(o_ref.dtype)


def _ln_geglu_ff_kernel(g_ref, b_ref, w1v_ref, b1v_ref, w1g_ref, b1g_ref,
                        w2_ref, b2_ref, x_ref, res_ref, o_ref, acc_ref, *, eps):
    """LayerNorm + GEGLU feed-forward + residual, tiled over the inner axis
    (grid axis 1, 'arbitrary') with an f32 accumulator."""
    j = pl.program_id(1)

    xf = x_ref[...].astype(jnp.float32)
    mean = jnp.mean(xf, axis=-1, keepdims=True)
    xc = xf - mean
    var = jnp.mean(xc * xc, axis=-1, keepdims=True)
    xn = (xc * jax.lax.rsqrt(var + eps) * g_ref[...].astype(jnp.float32)
          + b_ref[...].astype(jnp.float32)).astype(x_ref.dtype)

    val = (jnp.dot(xn, w1v_ref[...], preferred_element_type=jnp.float32)
           + b1v_ref[...].astype(jnp.float32))
    gate = (jnp.dot(xn, w1g_ref[...], preferred_element_type=jnp.float32)
            + b1g_ref[...].astype(jnp.float32))
    w2 = w2_ref[...]
    act = (val * _gelu_exact(gate)).astype(w2.dtype)
    part = jnp.dot(act, w2, preferred_element_type=jnp.float32)

    @pl.when(j == 0)
    def _():
        acc_ref[...] = jnp.zeros(acc_ref.shape, jnp.float32)

    acc_ref[...] += part

    @pl.when(j == pl.num_programs(1) - 1)
    def _():
        o_ref[...] = (acc_ref[...] + b2_ref[...].astype(jnp.float32)
                      + res_ref[...].astype(jnp.float32)).astype(o_ref.dtype)


# --------------------------------------------------------------------------
# pallas_call wrappers
# --------------------------------------------------------------------------
def pallas_fused_ln_proj(x2, weights, mul=None, add=None, *, eps=_LN_EPS):
    rows, D = x2.shape
    apply_ln = mul is not None
    n_out = len(weights)
    esz = jnp.dtype(x2.dtype).itemsize
    n_cols = [int(w.shape[1]) for w in weights]

    resident = sum(int(w.size) * jnp.dtype(w.dtype).itemsize for w in weights)
    if apply_ln:
        resident += 2 * D * 4
    per_row = (D + sum(n_cols)) * esz
    tile = _choose_tile_rows(rows, per_row, resident)
    rows_p = _round_up(rows, tile)
    xp = x2 if rows_p == rows else jnp.pad(x2, ((0, rows_p - rows), (0, 0)))

    in_specs, args = [], []
    if apply_ln:
        in_specs += [pl.BlockSpec((1, D), lambda i: (0, 0)),
                     pl.BlockSpec((1, D), lambda i: (0, 0))]
        args += [jnp.asarray(mul, jnp.float32).reshape(1, D),
                 jnp.asarray(add, jnp.float32).reshape(1, D)]
    for w in weights:
        in_specs.append(pl.BlockSpec((int(w.shape[0]), int(w.shape[1])),
                                     lambda i: (0, 0)))
        args.append(w)
    in_specs.append(pl.BlockSpec((tile, D), lambda i: (i, 0)))
    args.append(xp)

    outs = pl.pallas_call(
        _make_fused_proj_kernel(n_out, apply_ln, eps),
        out_shape=tuple(jax.ShapeDtypeStruct((rows_p, n), x2.dtype) for n in n_cols),
        grid_spec=pltpu.PrefetchScalarGridSpec(
            num_scalar_prefetch=0,
            grid=(rows_p // tile,),
            in_specs=in_specs,
            out_specs=[pl.BlockSpec((tile, n), lambda i: (i, 0)) for n in n_cols],
        ),
        compiler_params=_compiler_params(("parallel",)),
    )(*args)
    return tuple(o[:rows] for o in outs)


def pallas_flash_attention(qh, kh, vh, scale):
    BH, Sq, Dh = qh.shape
    Skv = kh.shape[1]
    esz = jnp.dtype(qh.dtype).itemsize

    tq = min(_round_up(Sq, 8), 256)
    Sq_p = _round_up(Sq, tq)
    tkv = _choose_kv_tile(Skv)

    per_bh = (2 * (tq * Dh + 2 * tkv * Dh) * esz        # double-buffered streams
              + (tq * Dh + 2 * tq) * 4                  # f32 acc/m/l scratch
              + 2 * tq * Dh * esz)                      # output block
    cap = max(1, _TILE_VMEM_BUDGET // max(per_bh, 1))
    if BH >= 2:                                         # >=2 parallel steps (v7x megacore)
        cap = min(cap, max(1, BH // 2))
    bh_tile = _largest_divisor_leq(BH, cap)

    qp = qh if Sq_p == Sq else jnp.pad(qh, ((0, 0), (0, Sq_p - Sq), (0, 0)))
    out = pl.pallas_call(
        functools.partial(_flash_attn_kernel, scale=float(scale)),
        out_shape=jax.ShapeDtypeStruct((BH, Sq_p, Dh), qh.dtype),
        grid_spec=pltpu.PrefetchScalarGridSpec(
            num_scalar_prefetch=0,
            grid=(BH // bh_tile, Sq_p // tq, Skv // tkv),
            in_specs=[
                pl.BlockSpec((bh_tile, tq, Dh), lambda b, i, k: (b, i, 0)),
                pl.BlockSpec((bh_tile, tkv, Dh), lambda b, i, k: (b, k, 0)),
                pl.BlockSpec((bh_tile, tkv, Dh), lambda b, i, k: (b, k, 0)),
            ],
            out_specs=pl.BlockSpec((bh_tile, tq, Dh), lambda b, i, k: (b, i, 0)),
            scratch_shapes=[pltpu.VMEM((bh_tile, tq, 1), jnp.float32),
                            pltpu.VMEM((bh_tile, tq, 1), jnp.float32),
                            pltpu.VMEM((bh_tile, tq, Dh), jnp.float32)],
        ),
        compiler_params=_compiler_params(("parallel", "parallel", "arbitrary")),
    )(qp, kh, vh)
    return out if Sq_p == Sq else out[:, :Sq, :]


def pallas_out_residual(x2, w, b, res2):
    rows, N = x2.shape
    D = int(w.shape[1])
    esz = jnp.dtype(x2.dtype).itemsize
    resident = int(w.size) * jnp.dtype(w.dtype).itemsize + D * 4
    per_row = (N + 2 * D) * esz
    tile = _choose_tile_rows(rows, per_row, resident)
    rows_p = _round_up(rows, tile)
    pad = rows_p - rows
    xp = x2 if pad == 0 else jnp.pad(x2, ((0, pad), (0, 0)))
    rp = res2 if pad == 0 else jnp.pad(res2, ((0, pad), (0, 0)))
    out = pl.pallas_call(
        _out_residual_kernel,
        out_shape=jax.ShapeDtypeStruct((rows_p, D), x2.dtype),
        grid_spec=pltpu.PrefetchScalarGridSpec(
            num_scalar_prefetch=0,
            grid=(rows_p // tile,),
            in_specs=[
                pl.BlockSpec((N, D), lambda i: (0, 0)),        # Wo (resident)
                pl.BlockSpec((1, D), lambda i: (0, 0)),        # bo
                pl.BlockSpec((tile, N), lambda i: (i, 0)),     # attention output rows
                pl.BlockSpec((tile, D), lambda i: (i, 0)),     # residual rows
            ],
            out_specs=pl.BlockSpec((tile, D), lambda i: (i, 0)),
        ),
        compiler_params=_compiler_params(("parallel",)),
    )(w, jnp.asarray(b, jnp.float32).reshape(1, D), xp, rp)
    return out[:rows]


def pallas_ln_geglu_ff(x2, gamma, beta, w1, b1, w2, b2, res2, *, eps=_LN_EPS):
    rows, D = x2.shape
    inner = int(w2.shape[0])
    Dout = int(w2.shape[1])
    # split W1 into value/gate halves so the (rows, 2*inner) slab never exists
    w1v, w1g = w1[:, :inner], w1[:, inner:]
    b1v = jnp.asarray(b1[:inner], jnp.float32).reshape(1, inner)
    b1g = jnp.asarray(b1[inner:], jnp.float32).reshape(1, inner)
    b2r = jnp.asarray(b2, jnp.float32).reshape(1, Dout)
    gam = jnp.asarray(gamma, jnp.float32).reshape(1, D)
    bet = jnp.asarray(beta, jnp.float32).reshape(1, D)

    wesz = jnp.dtype(w1.dtype).itemsize
    esz = jnp.dtype(x2.dtype).itemsize
    it = _choose_inner_tile(D, inner, Dout, wesz)
    n_it = inner // it

    resident = ((2 * D * it + 2 * it) * wesz
                + it * Dout * jnp.dtype(w2.dtype).itemsize
                + (2 * D + Dout) * 4)
    per_row = (D + 2 * Dout) * esz + (Dout + 3 * it) * 4
    tile = _choose_tile_rows(rows, per_row, resident)
    rows_p = _round_up(rows, tile)
    pad = rows_p - rows
    xp = x2 if pad == 0 else jnp.pad(x2, ((0, pad), (0, 0)))
    rp = res2 if pad == 0 else jnp.pad(res2, ((0, pad), (0, 0)))

    out = pl.pallas_call(
        functools.partial(_ln_geglu_ff_kernel, eps=eps),
        out_shape=jax.ShapeDtypeStruct((rows_p, Dout), x2.dtype),
        grid_spec=pltpu.PrefetchScalarGridSpec(
            num_scalar_prefetch=0,
            grid=(rows_p // tile, n_it),
            in_specs=[
                pl.BlockSpec((1, D), lambda i, j: (0, 0)),        # gamma
                pl.BlockSpec((1, D), lambda i, j: (0, 0)),        # beta
                pl.BlockSpec((D, it), lambda i, j: (0, j)),       # W1 value block
                pl.BlockSpec((1, it), lambda i, j: (0, j)),       # b1 value block
                pl.BlockSpec((D, it), lambda i, j: (0, j)),       # W1 gate block
                pl.BlockSpec((1, it), lambda i, j: (0, j)),       # b1 gate block
                pl.BlockSpec((it, Dout), lambda i, j: (j, 0)),    # W2 block
                pl.BlockSpec((1, Dout), lambda i, j: (0, 0)),     # b2
                pl.BlockSpec((tile, D), lambda i, j: (i, 0)),     # x rows
                pl.BlockSpec((tile, Dout), lambda i, j: (i, 0)),  # residual rows
            ],
            out_specs=pl.BlockSpec((tile, Dout), lambda i, j: (i, 0)),
            scratch_shapes=[pltpu.VMEM((tile, Dout), jnp.float32)],
        ),
        compiler_params=_compiler_params(("parallel", "arbitrary")),
    )(gam, bet, w1v, b1v, w1g, b1g, w2, b2r, xp, rp)
    return out[:rows]


# --------------------------------------------------------------------------
# module-level composition (thin JAX glue)
# --------------------------------------------------------------------------
def _ada_scale_shift(timestep, emb_table, lin_w, lin_b):
    """AdaLayerNorm modulation: SiLU + (1,D)x(D,2D) GEMV, hoisted out of the
    Pallas grid loop (computed exactly once per call)."""
    e = emb_table[timestep].astype(jnp.float32)
    se = e * jax.nn.sigmoid(e)
    emb = se @ lin_w.astype(jnp.float32) + lin_b.astype(jnp.float32)
    D = emb_table.shape[1]
    scale, shift = emb[:D], emb[D:]
    return 1.0 + scale, shift              # (1 + scale) precomputed once


def _split_heads(x2, B, S, heads, head_dim):
    return (x2.reshape(B, S, heads, head_dim).transpose(0, 2, 1, 3)
            .reshape(B * heads, S, head_dim))


def _merge_heads(oh, B, S, heads, head_dim):
    return (oh.reshape(B, heads, S, head_dim).transpose(0, 2, 1, 3)
            .reshape(B * S, heads * head_dim))


def basic_transformer_block(hidden_states, encoder_hidden_states, timestep, params,
                            *, heads, head_dim):
    B, S, D = hidden_states.shape
    S_enc, D_enc = encoder_hidden_states.shape[1], encoder_hidden_states.shape[2]
    rows = B * S
    scale = float(head_dim) ** -0.5
    h2 = hidden_states.reshape(rows, D)
    enc2 = encoder_hidden_states.reshape(B * S_enc, D_enc)

    # norm1 (AdaLayerNorm) fused with the self-attention QKV projections
    mul1, add1 = _ada_scale_shift(timestep, params['emb1'], params['lin1_w'], params['lin1_b'])
    q2, k2, v2 = pallas_fused_ln_proj(
        h2, (params['wq1'], params['wk1'], params['wv1']), mul1, add1)
    oh = pallas_flash_attention(_split_heads(q2, B, S, heads, head_dim),
                                _split_heads(k2, B, S, heads, head_dim),
                                _split_heads(v2, B, S, heads, head_dim), scale)
    a1 = _merge_heads(oh, B, S, heads, head_dim)
    h2 = pallas_out_residual(a1, params['wo1'], params['bo1'], h2)

    # norm2 (AdaLayerNorm) fused with the cross-attention Q projection;
    # K/V come from the (un-normalized) encoder states with one context read.
    mul2, add2 = _ada_scale_shift(timestep, params['emb2'], params['lin2_w'], params['lin2_b'])
    (q2,) = pallas_fused_ln_proj(h2, (params['wq2'],), mul2, add2)
    k2, v2 = pallas_fused_ln_proj(enc2, (params['wk2'], params['wv2']))
    oh = pallas_flash_attention(_split_heads(q2, B, S, heads, head_dim),
                                _split_heads(k2, B, S_enc, heads, head_dim),
                                _split_heads(v2, B, S_enc, heads, head_dim), scale)
    a2 = _merge_heads(oh, B, S, heads, head_dim)
    h2 = pallas_out_residual(a2, params['wo2'], params['bo2'], h2)

    # norm3 (affine LayerNorm) fused with the GEGLU feed-forward + residual
    out2 = pallas_ln_geglu_ff(h2, params['norm3_g'], params['norm3_b'],
                              params['ff_w1'], params['ff_b1'],
                              params['ff_w2'], params['ff_b2'], h2)
    return out2.reshape(B, S, D)


# --------------------------------------------------------------------------
# pure-JAX reference (mirrors the PyTorch forward)
# --------------------------------------------------------------------------
def _ref_layernorm(x, mul, add, eps=_LN_EPS):
    mean = jnp.mean(x, axis=-1, keepdims=True)
    var = jnp.mean((x - mean) ** 2, axis=-1, keepdims=True)
    return (x - mean) * jax.lax.rsqrt(var + eps) * mul + add


def _ref_attention(xq, ctx, wq, wk, wv, wo, bo, heads, head_dim):
    B, S, _ = xq.shape
    Skv = ctx.shape[1]
    q = (xq @ wq).reshape(B, S, heads, head_dim).transpose(0, 2, 1, 3)
    k = (ctx @ wk).reshape(B, Skv, heads, head_dim).transpose(0, 2, 1, 3)
    v = (ctx @ wv).reshape(B, Skv, heads, head_dim).transpose(0, 2, 1, 3)
    s = jnp.einsum('bhqd,bhkd->bhqk', q, k) * (float(head_dim) ** -0.5)
    p = jax.nn.softmax(s, axis=-1)
    o = jnp.einsum('bhqk,bhkd->bhqd', p, v)
    o = o.transpose(0, 2, 1, 3).reshape(B, S, heads * head_dim)
    return o @ wo + bo


def basic_transformer_block_ref(hidden_states, encoder_hidden_states, timestep, params,
                                *, heads, head_dim):
    D = hidden_states.shape[-1]

    def ada_ln(x, table, w, b):
        e = table[timestep]
        se = e * jax.nn.sigmoid(e)
        emb = se @ w + b
        scale, shift = emb[:D], emb[D:]
        return _ref_layernorm(x, 1.0 + scale, shift)

    h = hidden_states
    n1 = ada_ln(h, params['emb1'], params['lin1_w'], params['lin1_b'])
    h = _ref_attention(n1, n1, params['wq1'], params['wk1'], params['wv1'],
                       params['wo1'], params['bo1'], heads, head_dim) + h
    n2 = ada_ln(h, params['emb2'], params['lin2_w'], params['lin2_b'])
    h = _ref_attention(n2, encoder_hidden_states, params['wq2'], params['wk2'],
                       params['wv2'], params['wo2'], params['bo2'], heads, head_dim) + h
    n3 = _ref_layernorm(h, params['norm3_g'], params['norm3_b'])
    hh = n3 @ params['ff_w1'] + params['ff_b1']
    inner = params['ff_w2'].shape[0]
    value, gate = hh[..., :inner], hh[..., inner:]
    gelu = 0.5 * gate * (1.0 + jax.scipy.special.erf(gate * 0.7071067811865476))
    ff = (value * gelu) @ params['ff_w2'] + params['ff_b2']
    return ff + h


# --------------------------------------------------------------------------
# main
# --------------------------------------------------------------------------
if __name__ == "__main__":
    key = jax.random.PRNGKey(0)
    keys = jax.random.split(key, 24)
    ki = iter(keys)

    # Small deterministic config: BasicTransformerBlock(dim=32, heads=2,
    # head_dim=16, cross_attention_dim=32, num_embeds_ada_norm=16,
    # norm_type='ada_norm', activation_fn='geglu').
    dim, heads, head_dim = 32, 2, 16
    inner_dim = heads * head_dim          # attention inner dim
    cross_dim = 32
    ff_inner = 4 * dim                    # FeedForward mult=4
    num_embeds = 16
    B, S, S_enc = 2, 8, 8

    def rnd(k, shape, s=0.05):
        return jax.random.normal(k, shape, jnp.float32) * s

    params = {
        # norm1 / norm2: AdaLayerNorm (embedding table + Linear(D -> 2D), stored as weight.T)
        'emb1': jax.random.normal(next(ki), (num_embeds, dim), jnp.float32),
        'lin1_w': rnd(next(ki), (dim, 2 * dim)),
        'lin1_b': rnd(next(ki), (2 * dim,)),
        'emb2': jax.random.normal(next(ki), (num_embeds, dim), jnp.float32),
        'lin2_w': rnd(next(ki), (dim, 2 * dim)),
        'lin2_b': rnd(next(ki), (2 * dim,)),
        # attn1 (self-attention), attention_bias=False -> only to_out has a bias
        'wq1': rnd(next(ki), (dim, inner_dim)),
        'wk1': rnd(next(ki), (dim, inner_dim)),
        'wv1': rnd(next(ki), (dim, inner_dim)),
        'wo1': rnd(next(ki), (inner_dim, dim)),
        'bo1': rnd(next(ki), (dim,)),
        # attn2 (cross-attention)
        'wq2': rnd(next(ki), (dim, inner_dim)),
        'wk2': rnd(next(ki), (cross_dim, inner_dim)),
        'wv2': rnd(next(ki), (cross_dim, inner_dim)),
        'wo2': rnd(next(ki), (inner_dim, dim)),
        'bo2': rnd(next(ki), (dim,)),
        # norm3: affine LayerNorm
        'norm3_g': 1.0 + rnd(next(ki), (dim,)),
        'norm3_b': rnd(next(ki), (dim,)),
        # FeedForward (GEGLU): Linear(D -> 2*ff_inner), Linear(ff_inner -> D)
        'ff_w1': rnd(next(ki), (dim, 2 * ff_inner)),
        'ff_b1': rnd(next(ki), (2 * ff_inner,)),
        'ff_w2': rnd(next(ki), (ff_inner, dim)),
        'ff_b2': rnd(next(ki), (dim,)),
    }

    x = jax.random.normal(next(ki), (B, S, dim), jnp.float32)
    enc = jax.random.normal(next(ki), (B, S_enc, cross_dim), jnp.float32)
    timestep = jnp.int32(3)

    out = basic_transformer_block(x, enc, timestep, params, heads=heads, head_dim=head_dim)
    out = jax.block_until_ready(out)

    ref = basic_transformer_block_ref(x, enc, timestep, params, heads=heads, head_dim=head_dim)
    ref = jax.block_until_ready(ref)

    # Tolerance headroom for MXU pass decomposition, the online-softmax
    # accumulation order, the EUP approximate reciprocal in the flash epilogue
    # (~2^-12 rel) and the 1.5e-7-accurate in-kernel erf approximation.
    if not np.allclose(np.asarray(out), np.asarray(ref), atol=1e-3, rtol=1e-3):
        err = float(jnp.max(jnp.abs(out - ref)))
        raise AssertionError(
            f"Pallas BasicTransformerBlock mismatch vs reference (max abs err {err:.3e})")

    print("KERNEL_OK")
</pallas_src>

<mosaic_0001>
module attributes {stable_mosaic.version = 11 : i64} {
  func.func @kernel(%arg0: i32, %arg1: memref<1x32xf32, #tpu.memory_space<vmem>>, %arg2: memref<1x32xf32, #tpu.memory_space<vmem>>, %arg3: memref<32x32xf32, #tpu.memory_space<vmem>>, %arg4: memref<32x32xf32, #tpu.memory_space<vmem>>, %arg5: memref<32x32xf32, #tpu.memory_space<vmem>>, %arg6: memref<8x32xf32, #tpu.memory_space<vmem>>, %arg7: memref<8x32xf32, #tpu.memory_space<vmem>>, %arg8: memref<8x32xf32, #tpu.memory_space<vmem>>, %arg9: memref<8x32xf32, #tpu.memory_space<vmem>>) attributes {dimension_semantics = [#tpu.dimension_semantics<parallel>], iteration_bounds = array<i64: 2>, scalar_prefetch = 0 : i64, scratch_operands = 0 : i64, tpu.core_type = #tpu.core_type<tc>, window_params = [{pipeline_mode = #tpu.pipeline_mode<synchronous>, transform_indices = @transform_0, window_bounds = array<i64: 1, 32>}, {pipeline_mode = #tpu.pipeline_mode<synchronous>, transform_indices = @transform_1, window_bounds = array<i64: 1, 32>}, {pipeline_mode = #tpu.pipeline_mode<synchronous>, transform_indices = @transform_2, window_bounds = array<i64: 32, 32>}, {pipeline_mode = #tpu.pipeline_mode<synchronous>, transform_indices = @transform_3, window_bounds = array<i64: 32, 32>}, {pipeline_mode = #tpu.pipeline_mode<synchronous>, transform_indices = @transform_4, window_bounds = array<i64: 32, 32>}, {transform_indices = @transform_5, window_bounds = array<i64: 8, 32>}, {transform_indices = @transform_6, window_bounds = array<i64: 8, 32>}, {transform_indices = @transform_7, window_bounds = array<i64: 8, 32>}, {transform_indices = @transform_8, window_bounds = array<i64: 8, 32>}]} {
    %c0 = arith.constant 0 : index
    %c0_0 = arith.constant 0 : index
    %0 = vector.load %arg6[%c0, %c0_0] : memref<8x32xf32, #tpu.memory_space<vmem>>, vector<8x32xf32>
    %c0_1 = arith.constant 0 : index
    %c0_2 = arith.constant 0 : index
    %1 = vector.load %arg1[%c0_1, %c0_2] : memref<1x32xf32, #tpu.memory_space<vmem>>, vector<1x32xf32>
    %c0_3 = arith.constant 0 : index
    %c0_4 = arith.constant 0 : index
    %2 = vector.load %arg2[%c0_3, %c0_4] : memref<1x32xf32, #tpu.memory_space<vmem>>, vector<1x32xf32>
    %cst = arith.constant dense<0.000000e+00> : vector<8xf32>
    %3 = vector.multi_reduction <add>, %0, %cst [1] : vector<8x32xf32> to vector<8xf32>
    %4 = vector.shape_cast %3 : vector<8xf32> to vector<8x1xf32>
    %cst_5 = arith.constant 3.200000e+01 : f32
    %5 = vector.broadcast %cst_5 : f32 to vector<8x1xf32>
    %6 = arith.divf %4, %5 : vector<8x1xf32>
    %7 = vector.broadcast %6 : vector<8x1xf32> to vector<8x32xf32>
    %8 = arith.subf %0, %7 : vector<8x32xf32>
    %9 = arith.mulf %8, %8 : vector<8x32xf32>
    %cst_6 = arith.constant dense<0.000000e+00> : vector<8xf32>
    %10 = vector.multi_reduction <add>, %9, %cst_6 [1] : vector<8x32xf32> to vector<8xf32>
    %11 = vector.shape_cast %10 : vector<8xf32> to vector<8x1xf32>
    %cst_7 = arith.constant 3.200000e+01 : f32
    %12 = vector.broadcast %cst_7 : f32 to vector<8x1xf32>
    %13 = arith.divf %11, %12 : vector<8x1xf32>
    %cst_8 = arith.constant 9.99999974E-6 : f32
    %14 = vector.broadcast %cst_8 : f32 to vector<8x1xf32>
    %15 = arith.addf %13, %14 : vector<8x1xf32>
    %16 = math.rsqrt %15 : vector<8x1xf32>
    %17 = vector.broadcast %16 : vector<8x1xf32> to vector<8x32xf32>
    %18 = arith.mulf %8, %17 : vector<8x32xf32>
    %19 = vector.broadcast %1 : vector<1x32xf32> to vector<8x32xf32>
    %20 = arith.mulf %18, %19 : vector<8x32xf32>
    %21 = vector.broadcast %2 : vector<1x32xf32> to vector<8x32xf32>
    %22 = arith.addf %20, %21 : vector<8x32xf32>
    %c0_9 = arith.constant 0 : index
    %c0_10 = arith.constant 0 : index
    %23 = vector.load %arg3[%c0_9, %c0_10] : memref<32x32xf32, #tpu.memory_space<vmem>>, vector<32x32xf32>
    %cst_11 = arith.constant dense<0.000000e+00> : vector<8x32xf32>
    %24 = tpu.matmul %22, %23, %cst_11 {dimension_numbers = #tpu.dot_dimension_numbers<[1], [0], [0], [1], [0, 0, 1, 1], [], []>, precision = #tpu.contract_precision<fp32>} : vector<8x32xf32>, vector<32x32xf32>, vector<8x32xf32> -> vector<8x32xf32>
    %c0_12 = arith.constant 0 : index
    %c0_13 = arith.constant 0 : index
    %25 = vector.load %arg7[%c0_12, %c0_13] : memref<8x32xf32, #tpu.memory_space<vmem>>, vector<8x32xf32>
    tpu.vector_store %arg7[%c0_12, %c0_13], %24 {strides = array<i32>} : memref<8x32xf32, #tpu.memory_space<vmem>>, vector<8x32xf32>,
    %c0_14 = arith.constant 0 : index
    %c0_15 = arith.constant 0 : index
    %26 = vector.load %arg4[%c0_14, %c0_15] : memref<32x32xf32, #tpu.memory_space<vmem>>, vector<32x32xf32>
    %cst_16 = arith.constant dense<0.000000e+00> : vector<8x32xf32>
    %27 = tpu.matmul %22, %26, %cst_16 {dimension_numbers = #tpu.dot_dimension_numbers<[1], [0], [0], [1], [0, 0, 1, 1], [], []>, precision = #tpu.contract_precision<fp32>} : vector<8x32xf32>, vector<32x32xf32>, vector<8x32xf32> -> vector<8x32xf32>
    %c0_17 = arith.constant 0 : index
    %c0_18 = arith.constant 0 : index
    %28 = vector.load %arg8[%c0_17, %c0_18] : memref<8x32xf32, #tpu.memory_space<vmem>>, vector<8x32xf32>
    tpu.vector_store %arg8[%c0_17, %c0_18], %27 {strides = array<i32>} : memref<8x32xf32, #tpu.memory_space<vmem>>, vector<8x32xf32>,
    %c0_19 = arith.constant 0 : index
    %c0_20 = arith.constant 0 : index
    %29 = vector.load %arg5[%c0_19, %c0_20] : memref<32x32xf32, #tpu.memory_space<vmem>>, vector<32x32xf32>
    %cst_21 = arith.constant dense<0.000000e+00> : vector<8x32xf32>
    %30 = tpu.matmul %22, %29, %cst_21 {dimension_numbers = #tpu.dot_dimension_numbers<[1], [0], [0], [1], [0, 0, 1, 1], [], []>, precision = #tpu.contract_precision<fp32>} : vector<8x32xf32>, vector<32x32xf32>, vector<8x32xf32> -> vector<8x32xf32>
    %c0_22 = arith.constant 0 : index
    %c0_23 = arith.constant 0 : index
    %31 = vector.load %arg9[%c0_22, %c0_23] : memref<8x32xf32, #tpu.memory_space<vmem>>, vector<8x32xf32>
    tpu.vector_store %arg9[%c0_22, %c0_23], %30 {strides = array<i32>} : memref<8x32xf32, #tpu.memory_space<vmem>>, vector<8x32xf32>,
    return
  }
  func.func @transform_0(%arg0: i32) -> (i32, i32) {
    %c0_i32 = arith.constant 0 : i32
    %c0_i32_0 = arith.constant 0 : i32
    %c0_i32_1 = arith.constant 0 : i32
    return %c0_i32, %c0_i32_0 : i32, i32
  }
  func.func @transform_1(%arg0: i32) -> (i32, i32) {
    %c0_i32 = arith.constant 0 : i32
    %c0_i32_0 = arith.constant 0 : i32
    %c0_i32_1 = arith.constant 0 : i32
    return %c0_i32, %c0_i32_0 : i32, i32
  }
  func.func @transform_2(%arg0: i32) -> (i32, i32) {
    %c0_i32 = arith.constant 0 : i32
    %c0_i32_0 = arith.constant 0 : i32
    %c0_i32_1 = arith.constant 0 : i32
    return %c0_i32, %c0_i32_0 : i32, i32
  }
  func.func @transform_3(%arg0: i32) -> (i32, i32) {
    %c0_i32 = arith.constant 0 : i32
    %c0_i32_0 = arith.constant 0 : i32
    %c0_i32_1 = arith.constant 0 : i32
    return %c0_i32, %c0_i32_0 : i32, i32
  }
  func.func @transform_4(%arg0: i32) -> (i32, i32) {
    %c0_i32 = arith.constant 0 : i32
    %c0_i32_0 = arith.constant 0 : i32
    %c0_i32_1 = arith.constant 0 : i32
    return %c0_i32, %c0_i32_0 : i32, i32
  }
  func.func @transform_5(%arg0: i32) -> (i32, i32) {
    %c0_i32 = arith.constant 0 : i32
    %c0_i32_0 = arith.constant 0 : i32
    return %arg0, %c0_i32 : i32, i32
  }
  func.func @transform_6(%arg0: i32) -> (i32, i32) {
    %c0_i32 = arith.constant 0 : i32
    %c0_i32_0 = arith.constant 0 : i32
    return %arg0, %c0_i32 : i32, i32
  }
  func.func @transform_7(%arg0: i32) -> (i32, i32) {
    %c0_i32 = arith.constant 0 : i32
    %c0_i32_0 = arith.constant 0 : i32
    return %arg0, %c0_i32 : i32, i32
  }
  func.func @transform_8(%arg0: i32) -> (i32, i32) {
    %c0_i32 = arith.constant 0 : i32
    %c0_i32_0 = arith.constant 0 : i32
    return %arg0, %c0_i32 : i32, i32
  }
}

</mosaic_0001>

<bundles_post_ra>
// kernel: tpu_custom_call.1
= control target key start
LH: loop header
LB: loop body
LE: loop exit
PB: predicated region body
PF: predicated region fallthrough
CT: control target
= control target key end

     0   :  { %s2139_s0 = inlined_call_operand.hbm [shape: f32[1,32], index: 0, kind: input, shape index: {}]   ;;  %s2140_s1 = inlined_call_operand.hbm [shape: f32[1,32], index: 1, kind: input, shape index: {}]   ;;  %s2141_s2 = inlined_call_operand.hbm [shape: f32[32,32], index: 2, kind: input, shape index: {}]   ;;  %s2142_s3 = inlined_call_operand.hbm [shape: f32[32,32], index: 3, kind: input, shape index: {}]   ;;  %s2143_s4 = inlined_call_operand.hbm [shape: f32[32,32], index: 4, kind: input, shape index: {}]   ;;  %s2144_s5 = inlined_call_operand.hbm [shape: f32[16,32], index: 5, kind: input, shape index: {}]   ;;  %s2145_s6 = inlined_call_operand.hbm [shape: f32[16,32], index: 6, kind: output, shape index: {0}]   ;;  %s2146_s7 = inlined_call_operand.hbm [shape: f32[16,32], index: 7, kind: output, shape index: {1}]   ;;  %s2147_s8 = inlined_call_operand.hbm [shape: f32[16,32], index: 8, kind: output, shape index: {2}]  }
   0x1   :  { %2149 = sst [smem:[#allocation23_spill]] %s2139_s0 }
   0x2   :  { %2150 = sst [smem:[#allocation24_spill]] %s2140_s1 }
   0x3   :  { %14 = vsyncpa [#allocation3], 0 }
   0x4   :  { %15 = vsyncpa [#allocation6], 0 }
   0x5   :  { %16 = vsyncpa [#allocation9], 0 }
   0x6   :  { %17 = vsyncpa [#allocation12], 0 }
   0x7   :  { %19 = vsyncpa [#allocation12 + $0x1], 0 }
   0x8   :  { %20 = vsyncpa [#allocation4], 0 }
   0x9   :  { %22 = vsyncpa [#allocation4 + $0x1], 0 }
   0xa   :  { %23 = vsyncpa [#allocation15], 0 }
   0xb   :  { %25 = vsyncpa [#allocation15 + $0x1], 0  ;;  %s1788_s27 = smov 0   ;;  %s1790_s28 = smov 0  }
   0xc   :  { %s1792_s29 = smov 0   ;;  %s1794_s30 = smov 0  }
   0xd LB: > { %s2151_s1 = sld [smem:[#allocation24_spill]]  ;;  %s1812_s12 = sadd.s32 4294967295, %s1733_s30   ;;  %s1733_s30 = sphi %s1794_s30, %s2164_s30   ;;  %s1729_s29 = sphi %s1792_s29, %s2163_s29   ;;  %s1725_s28 = sphi %s1790_s28, %s2162_s28   ;;  %s1721_s27 = sphi %s1788_s27, %s2161_s27  }
   0xe   : > { %p1272_p0 = scmp.ge.s32.totalorder %s1733_s30, 1  ;;  %p157_p1 = scmp.eq.s32.totalorder %s1812_s12, 0 }
   0xf   : > { %p245_p2 = scmp.lt.s32.totalorder %s1733_s30, 3  ;;  %s1735_s14 = smov [#allocation5]  }
  0x10   : > { %s271_s15 = sshll.u32 %s1735_s14, 4  ;;  %s294_s18 = sshll.u32 %s2142_s3, 4  ;;  %s272_s15 = int_to_ptr.vmem [resolvable:$true] %s271_s15  ;;  %s295_s18 = int_to_ptr.hbm [resolvable:$true] %s294_s18 }
  0x11   : > { %p1817_p3 = pnand %p1272_p0, %p245_p2  ;;  %s2154_s0 = sld [smem:[#allocation23_spill]] }
  0x12   : > { %s1736_s23 = smov [#allocation8]   ;;  %s1737_s25 = smov 128  }
  0x13   : > { %s269_s11 = sshll.u32 %s2151_s1, 4  ;;  %p1327_p5 = pneg %p1817_p3  ;;  %s270_s11 = int_to_ptr.hbm [resolvable:$true] %s269_s11 }
  0x14   : > { %s296_s24 = sshll.u32 %s1736_s23, 4  ;;  %s1738_s26 = smov 8   ;;  %s297_s24 = int_to_ptr.vmem [resolvable:$true] %s296_s24 }
  0x15   : > { %p1829_p6 = pnand %p1327_p5, %p157_p1  ;;  %s280_s14 = sshll.u32 %s2141_s2, 4  ;;  %s281_s14 = int_to_ptr.hbm [resolvable:$true] %s280_s14 }
  0x16   : > { %s1739_s16 = smov [#allocation2]   ;;  %s308_s21 = sshll.u32 %s2143_s4, 4  ;;  %s309_s21 = int_to_ptr.hbm [resolvable:$true] %s308_s21 }
  0x17   : > { %s257_s22 = sshll.u32 %s2154_s0, 4  ;;  %s259_s17 = sshll.u32 %s1739_s16, 4  ;;  %s258_s22 = int_to_ptr.hbm [resolvable:$true] %s257_s22  ;;  %s260_s17 = int_to_ptr.vmem [resolvable:$true] %s259_s17 }
  0x18   : > { %1333 = dma.hbm_to_vmem [thread:$0]  (!%p1829_p6), %s270_s11, 16, %s272_s15, [#allocation6]  }
  0x19   : > { %1339 = dma.hbm_to_vmem [thread:$0]  (!%p1829_p6), %s295_s18, 512, %s297_s24, [#allocation9], %s1737_s25, %s1737_s25, %s1738_s26  }
  0x1a   : > { %1330 = dma.hbm_to_vmem [thread:$0]  (!%p1829_p6), %s258_s22, 16, %s260_s17, [#allocation3]  }
  0x1b   : > { %s1740_s11 = smov [#allocation7]   ;;  %s1741_s23 = smov [#allocation10]  }
  0x1c   : > { %s282_s15 = sshll.u32 %s1740_s11, 4  ;;  %s310_s24 = sshll.u32 %s1741_s23, 4  ;;  %s283_s15 = int_to_ptr.vmem [resolvable:$true] %s282_s15  ;;  %s311_s24 = int_to_ptr.vmem [resolvable:$true] %s310_s24 }
  0x1d   : > { %1336 = dma.hbm_to_vmem [thread:$0]  (!%p1829_p6), %s281_s14, 512, %s283_s15, [#allocation6], %s1737_s25, %s1737_s25, %s1738_s26  }
  0x1e   : > { %1342 = dma.hbm_to_vmem [thread:$0]  (!%p1829_p6), %s309_s21, 512, %s311_s24, [#allocation9], %s1737_s25, %s1737_s25, %s1738_s26  }
  0x1f   : > { %s2148_s22 = sadd.s32 4294967294, %s1733_s30   ;;  %s1854_s9 = sadd.s32 1, %s1733_s30  }
  0x20   : > { %s143_s10 = sadd.s32 1, %s1729_s29  ;;  %s140_s16 = ssub.s32 %s1733_s30, %s1854_s9 }
  0x21   : > { %p150_p7 = scmp.ne.s32.totalorder %s1729_s29, %s1725_s28  ;;  %p141_p8 = scmp.eq.s32.totalorder %s140_s16, 0 }
  0x22   : > { %p151_p9 = scmp.eq.s32.totalorder %s1733_s30, 0  ;;  %p156_p10 = scmp.ne.s32.totalorder %s1725_s28, %s1721_s27 }
  0x23   : > { %p180_p11 = scmp.eq.s32.totalorder %s1812_s12, 1  ;;  %p186_p0 = scmp.eq.s32.totalorder %s2148_s22, 1 }
  0x24   : > { %s1866_s14 = scalar_select %p141_p8, %s1729_s29, %s143_s10  }
  0x25   : > { %p1870_p12 = por %p157_p1, %p156_p10  ;;  %p1874_p13 = por %p180_p11, %p150_p7 }
  0x26   : > { %p152_p2 = por %p151_p9, %p150_p7  ;;  %s324_s26 = sand.u32 1, %s1729_s29  }
  0x27   : > { %p1881_p5 = por %p186_p0, %p156_p10  ;;  %p1362_p6 = scmp.lt.s32.totalorder %s1733_s30, 2 }
  0x28   : > { %s1279_s11 = sshll.u32 %s324_s26, 3  ;;  %s1280_s15 = sshll.u32 %s1733_s30, 3 }
  0x29   : > { %s332_s21 = scalar_lea.hbm %s2144_s5, %s1280_s15  ;;  %s328_s24 = scalar_lea.vmem [#allocation11], %s1279_s11 }
  0x2a   : > { %s334_s23 = sshll.u32 %s332_s21, 4  ;;  %s336_s10 = sshll.u32 %s328_s24, 4  ;;  %s335_s23 = int_to_ptr.hbm [resolvable:$true] %s334_s23  ;;  %s337_s10 = int_to_ptr.vmem [resolvable:$true] %s336_s10 }
  0x2b   : > { %p1890_p8 = pnand %p1362_p6, %p152_p2  ;;  %s325_s22 = scalar_lea.sflag [#allocation12], %s324_s26 }
  0x2c   : > { %s1565_s0 = sshra.s32 %s335_s23, 4  ;;  %s1572_s11 = scalar_lea.hbm %s2144_s5, 16  ;;  %s1566_s0 = int_to_ptr.hbm [resolvable:$true] %s1565_s0 }
  0x2d   : > { %s1567_s1 = scalar_lea.hbm %s1566_s0, 8  ;;  %p1569_p9 = pneg %p1890_p8 }
  0x2e   : > { %p1568_p7 = scmp.ne.s32.totalorder %s1566_s0, %s1567_s1  ;;  %p1573_p0 = scmp.lt.s32.totalorder %s1566_s0, %s2144_s5 }
  0x2f   : > { %p1574_p2 = scmp.lt.s32.totalorder %s1572_s11, %s1567_s1 }
  0x30   : > { %p1570_p10 = pnand %p1569_p9, %p1568_p7 }
  0x31   : > { %p1575_p6 = por %p1574_p2, %p1573_p0 }
  0x32   : > { %p1571_p11 = pneg %p1570_p10 }
  0x34   : > { %p1576_p4 = pnand %p1575_p6, %p1571_p11 }
  0x36   : > { %1579 = shalt.err (!%p1576_p4)
}
  0x37   : > { %1346 = dma.hbm_to_vmem [thread:$0]  (!%p1890_p8), %s335_s23, 128, %s337_s10, %s325_s22  }
  0x38   : > { %345 = sbr.rel (%p1817_p3) target bundleno = 520 (0x208), region = 44 }
  0x3d   : > { %1696 = dma.done.wait (%p157_p1), [#allocation3], 16  }
  0x3e   : > { %1698 = vsyncadd (%p157_p1), [#allocation3], 4294967280 }
  0x3f   : > { %1700 = dma.done.wait (%p157_p1), [#allocation6], 528  }
  0x40   : > { %1702 = vsyncadd (%p157_p1), [#allocation6], 4294966768 }
  0x41   : > { %1704 = dma.done.wait (%p157_p1), [#allocation9], 1024  }
  0x42   : > { %1706 = vsyncadd (%p157_p1), [#allocation9], 4294966272  ;;  %s1919_s0 = sand.u32 1, %s1725_s28  }
  0x43   : > { %s1922_s1 = sshll.u32 %s1919_s0, 3  ;;  %s373_s13 = scalar_lea.sflag [#allocation12], %s1919_s0 }
  0x44   : > { %s376_s22 = scalar_lea.vmem [#allocation11], %s1922_s1 }
  0x45   : > { %1708 = dma.done.wait (%p1870_p12), %s373_s13, 128  }
  0x46   : > { %1710 = vsyncadd (%p1870_p12), %s373_s13, 4294967168  ;;  %vm423_vm0 = vcmask 261120   ;;  %v420_v0 = vld [vmem:[%s376_s22] sm:$0xff]  ;;  %v1742_v2 = vmov 32.0   ;;  %v464_v14 = vld [vmem:[#allocation7 + $0x18] sm:$0xff]  ;;  %s2063_s19 = sshll.u32 %s1812_s12, 3 }
  0x47   : > { %v424_v1 = vsel %vm423_vm0, %v420_v0, 0.0  ;;  %1411 = vrcp.f32 %v1742_v2  ;;  %v480_v15 = vand.u32 4294901760, %v464_v14  ;;  %v463_v16 = vld [vmem:[#allocation7 + $0x10] sm:$0xff]  ;;  %v462_v19 = vld [vmem:[#allocation7 + $0x8] sm:$0xff]  ;;  %v461_v23 = vld [vmem:[#allocation7] sm:$0xff]  ;;  %s1055_s24 = scalar_lea.hbm %s2145_s6, %s2063_s19  ;;  %s405_s10 = scalar_lea.vmem [#allocation13], %s1922_s1 }
  0x48   : > { %425 = vadd.xlane.f32.xlu0 %v424_v1  ;;  %v482_v18 = vand.u32 4294901760, %v463_v16  ;;  %v484_v22 = vand.u32 4294901760, %v462_v19  ;;  %v486_v27 = vand.u32 4294901760, %v461_v23  ;;  %v657_v35 = vld [vmem:[#allocation8 + $0x18] sm:$0xff]  ;;  %v656_v39 = vld [vmem:[#allocation8 + $0x10] sm:$0xff]  ;;  %v655_v43 = vld [vmem:[#allocation8 + $0x8] sm:$0xff] }
  0x49   : > { %v510_v17 = vsub.f32 %v464_v14, %v480_v15  ;;  %581 = vmatpush.msra.mxu3 %v480_v15  ;;  %481 = vmatpush.msra.mxu0 %v480_v15  ;;  %v1939_v38 = vand.u32 4294901760, %v657_v35  ;;  %v1942_v41 = vand.u32 4294901760, %v656_v39  ;;  %v1949_v45 = vand.u32 4294901760, %v655_v43  ;;  %v654_v48 = vld [vmem:[#allocation8] sm:$0xff]  ;;  %s1057_s16 = sshll.u32 %s405_s10, 4  ;;  %s1059_s15 = sshll.u32 %s1055_s24, 4  ;;  %s1058_s16 = int_to_ptr.vmem [resolvable:$true] %s1057_s16  ;;  %s1060_s15 = int_to_ptr.hbm [resolvable:$true] %s1059_s15 }
  0x4a   : > { %v516_v21 = vsub.f32 %v463_v16, %v482_v18  ;;  %v522_v26 = vsub.f32 %v462_v19, %v484_v22  ;;  %v528_v31 = vsub.f32 %v461_v23, %v486_v27  ;;  %v1960_v52 = vand.u32 4294901760, %v654_v48  ;;  %s1035_s18 = scalar_lea.sflag [#allocation4], %s1919_s0  ;;  %s1609_s11 = sshra.s32 %s1060_s15, 4  ;;  %s1610_s11 = int_to_ptr.hbm [resolvable:$true] %s1609_s11 }
  0x4b   : > { %v511_v20 = vand.u32 4294901760, %v510_v17  ;;  %552 = vmatpush.msra.mxu2 %v510_v17  ;;  %583 = vmatpush.msra.mxu3 %v482_v18  ;;  %v1945_v42 = vsub.f32 %v657_v35, %v1939_v38  ;;  %v1952_v46 = vsub.f32 %v656_v39, %v1942_v41  ;;  %v1963_v53 = vsub.f32 %v655_v43, %v1949_v45  ;;  %s1611_s20 = scalar_lea.hbm %s1610_s11, 8  ;;  %s1615_s22 = scalar_lea.hbm %s2145_s6, 16 }
  0x4c   : > { %483 = vmatpush.msra.mxu0 %v482_v18  ;;  %v517_v25 = vand.u32 4294901760, %v516_v21  ;;  %v523_v30 = vand.u32 4294901760, %v522_v26  ;;  %v529_v34 = vand.u32 4294901760, %v528_v31  ;;  %v1970_v57 = vsub.f32 %v654_v48, %v1960_v52  ;;  %p1612_p1 = scmp.ne.s32.totalorder %s1610_s11, %s1611_s20  ;;  %p1616_p12 = scmp.lt.s32.totalorder %s1610_s11, %s2145_s6 }
  0x4d   : > { %v1412_v3 = vpop.eup %1411  ;;  %v512_v24 = vsub.f32 %v510_v17, %v511_v20  ;;  %555 = vmatpush.msra.mxu2 %v516_v21  ;;  %585 = vmatpush.msra.mxu3 %v484_v22  ;;  %v701_v44 = vand.u32 4294901760, %v1945_v42  ;;  %v707_v51 = vand.u32 4294901760, %v1952_v46  ;;  %v713_v58 = vand.u32 4294901760, %v1963_v53  ;;  %p1617_p8 = scmp.lt.s32.totalorder %s1615_s22, %s1611_s20 }
  0x4e   : > { %v428_v4 = vmul.f32 32.0, %v1412_v3  ;;  %vm432_vm1 = vweird.f32 %v1412_v3  ;;  %485 = vmatpush.msra.mxu0 %v484_v22  ;;  %v518_v29 = vsub.f32 %v516_v21, %v517_v25  ;;  %v524_v33 = vsub.f32 %v522_v26, %v523_v30  ;;  %v844_v21 = vld [vmem:[#allocation10] sm:$0xff]  ;;  %p1613_p3 = pnand %p1612_p1, %p1874_p13 }
  0x4f   : > { %v513_v28 = vand.u32 4294901760, %v512_v24  ;;  %558 = vmatpush.msra.mxu2 %v522_v26  ;;  %587 = vmatpush.msra.mxu3 %v486_v27  ;;  %v530_v37 = vsub.f32 %v528_v31, %v529_v34  ;;  %v702_v50 = vsub.f32 %v1945_v42, %v701_v44  ;;  %v708_v56 = vsub.f32 %v1952_v46, %v707_v51  ;;  %p1618_p7 = por %p1617_p8, %p1616_p12 }
  0x50   : > { %v429_v5 = vsub.f32 1.0, %v428_v4  ;;  %487 = vmatpush.msra.mxu0 %v486_v27  ;;  %v519_v32 = vand.u32 4294901760, %v518_v29  ;;  %v525_v36 = vand.u32 4294901760, %v524_v33  ;;  %v719_v60 = vand.u32 4294901760, %v1970_v57  ;;  %p1614_p4 = pneg %p1613_p3 }
  0x51   : > { %514 = vmatpush.msra.mxu1 %v513_v28  ;;  %561 = vmatpush.msra.mxu2 %v528_v31  ;;  %v531_v40 = vand.u32 4294901760, %v530_v37  ;;  %v703_v55 = vand.u32 4294901760, %v702_v50  ;;  %v709_v59 = vand.u32 4294901760, %v708_v56  ;;  %v714_v61 = vsub.f32 %v1963_v53, %v713_v58 }
  0x52   : > { %v430_v6 = vmul.f32 %v1412_v3, %v429_v5  ;;  %610 = vmatpush.msrb.mxu0 %v511_v20  ;;  %v720_v62 = vsub.f32 %v1970_v57, %v719_v60  ;;  %p1619_p9 = pnand %p1618_p7, %p1614_p4 }
  0x53   : > { %520 = vmatpush.msra.mxu1 %v519_v32  ;;  %671 = vmatpush.msrb.mxu2 %v1939_v38  ;;  %v715_v63 = vand.u32 4294901760, %v714_v61 }
  0x54   : > { %v431_v7 = vadd.f32 %v1412_v3, %v430_v6  ;;  %614 = vmatpush.msrb.mxu0 %v517_v25  ;;  %704 = vmatpush.msrb.mxu3 %v703_v55  ;;  %v847_v6 = vld [vmem:[#allocation10 + $0x18] sm:$0xff]  ;;  %v1995_v25 = vand.u32 4294901760, %v844_v21 }
  0x55   : > { %526 = vmatpush.msra.mxu1 %v525_v36  ;;  %673 = vmatpush.msrb.mxu2 %v1942_v41 }
  0x56   : > { %v1931_v8 = vsel %vm432_vm1, %v1412_v3, %v431_v7  ;;  %618 = vmatpush.msrb.mxu0 %v523_v30  ;;  %710 = vmatpush.msrb.mxu3 %v709_v59  ;;  %v2008_v31 = vsub.f32 %v844_v21, %v1995_v25 }
  0x57   : > { %532 = vmatpush.msra.mxu1 %v531_v40  ;;  %675 = vmatpush.msrb.mxu2 %v1949_v45 }
  0x58   : > { %622 = vmatpush.msrb.mxu0 %v529_v34  ;;  %716 = vmatpush.msrb.mxu3 %v715_v63  ;;  %v909_v37 = vand.u32 4294901760, %v2008_v31 }
  0x59   : > { %641 = vmatpush.msrb.mxu1 %v480_v15  ;;  %677 = vmatpush.msrb.mxu2 %v1960_v52  ;;  %v845_v15 = vld [vmem:[#allocation10 + $0x8] sm:$0xff] }
  0x5a   : > { %v1986_v20 = vand.u32 4294901760, %v845_v15 }
  0x5b   : > { %643 = vmatpush.msrb.mxu1 %v482_v18 }
  0x5c   : > { %v1998_v26 = vsub.f32 %v845_v15, %v1986_v20 }
  0x5d   : > { %645 = vmatpush.msrb.mxu1 %v484_v22 }
  0x5e   : > { %v903_v32 = vand.u32 4294901760, %v1998_v26 }
  0x5f   : > { %647 = vmatpush.msrb.mxu1 %v486_v27 }
  0x60   : > { %v904_v39 = vsub.f32 %v1998_v26, %v903_v32 }
  0x62   : > { %v905_v43 = vand.u32 4294901760, %v904_v39 }
  0xbb   : > { %v426_v9 = vpop.xlane.xlu0 %425 }
  0xbc   : > { %v434_v10 = vmul.f32 %v1931_v8, %v426_v9 }
  0xbe   : > { %v1934_v11 = vsub.f32 %v420_v0, %v434_v10  ;;  %v721_v0 = vand.u32 4294901760, %v720_v62  ;;  %v1978_v10 = vand.u32 4294901760, %v847_v6 }
  0xc0   : > { %v436_v12 = vmul.f32 %v1934_v11, %v1934_v11  ;;  %722 = vmatpush.msrb.mxu3 %v721_v0  ;;  %v1984_v18 = vsub.f32 %v847_v6, %v1978_v10 }
  0xc2   : > { %v437_v13 = vsel %vm423_vm0, %v436_v12, 0.0  ;;  %v846_v12 = vld [vmem:[#allocation10 + $0x10] sm:$0xff] }
  0xc3   : > { %438 = vadd.xlane.f32.xlu0 %v437_v13  ;;  %v1410_v13 = vld [vmem:[#allocation5] ss:$0 sm:$0xff]  ;;  %v1981_v17 = vand.u32 4294901760, %v846_v12 }
  0xc5   : > { %v1990_v23 = vsub.f32 %v846_v12, %v1981_v17 }
  0xc7   : > { %v897_v28 = vand.u32 4294901760, %v1990_v23 }
  0xc9   : > { %v898_v34 = vsub.f32 %v1990_v23, %v897_v28 }
  0xcb   : > { %v899_v40 = vand.u32 4294901760, %v898_v34 }
 0x136   : > { %v439_v47 = vpop.xlane.xlu0 %438 }
 0x137   : > { %v440_v49 = vmul.f32 %v439_v47, %v1931_v8  ;;  %v1409_v8 = vld [vmem:[#allocation2] ss:$0 sm:$0xff] }
 0x139   : > { %v441_v54 = vadd.f32 1e-05, %v440_v49 }
 0x13b   : > { %1413 = vrsqrt.f32 %v441_v54  ;;  %vm448_vm3 = vweird.f32 %v441_v54 }
 0x141   : > { %v1414_v1 = vpop.eup %1413 }
 0x142   : > { %v443_v2 = vmul.f32 %v1414_v1, %v441_v54  ;;  %vm449_vm2 = vweird.f32 %v1414_v1 }
 0x143   : > { %vm450_vm4 = vmor %vm448_vm3, %vm449_vm2 }
 0x144   : > { %v444_v3 = vmul.f32 %v1414_v1, %v443_v2 }
 0x146   : > { %v445_v4 = vmul.f32 0.5, %v444_v3 }
 0x148   : > { %v446_v5 = vsub.f32 1.5, %v445_v4 }
 0x14a   : > { %v447_v7 = vmul.f32 %v1414_v1, %v446_v5 }
 0x14c   : > { %v451_v9 = vsel %vm450_vm4, %v1414_v1, %v447_v7 }
 0x14d   : > { %v452_v14 = vmul.f32 %v451_v9, %v1934_v11  ;;  %v891_v11 = vand.u32 4294901760, %v1984_v18 }
 0x14f   : > { %v456_v16 = vmul.f32 %v1409_v8, %v452_v14  ;;  %v892_v30 = vsub.f32 %v1984_v18, %v891_v11 }
 0x151   : > { %v460_v19 = vadd.f32 %v1410_v13, %v456_v16  ;;  %v893_v36 = vand.u32 4294901760, %v892_v30 }
 0x153   : > { %v466_v22 = vsel %vm423_vm0, %v460_v19, 0 }
 0x154   : > { %v1992_v24 = vand.u32 4294901760, %v466_v22 }
 0x156   : > { %534 = vmatmul.f32.vlgmr.msra.gmra.mxu1 %v1992_v24  ;;  %v489_v27 = vsub.f32 %v466_v22, %v1992_v24 }
 0x157   : > { %771 = vmatpush.msra.mxu1 %v1939_v38 }
 0x158   : > { %564 = vmatmul.f32.vlgmr.msra.gmra.mxu2 %v489_v27  ;;  %v490_v29 = vand.u32 4294901760, %v489_v27 }
 0x159   : > { %773 = vmatpush.msra.mxu1 %v1942_v41  ;;  %800 = vmatpush.msra.mxu2 %v701_v44 }
 0x15a   : > { %591 = vmatmul.f32.vlgmr.msra.gmra.mxu3 %v490_v29  ;;  %v491_v33 = vsub.f32 %v489_v27, %v490_v29 }
 0x15b   : > { %775 = vmatpush.msra.mxu1 %v1949_v45  ;;  %804 = vmatpush.msra.mxu2 %v707_v51 }
 0x15c   : > { %v492_v35 = vand.u32 4294901760, %v491_v33  ;;  %831 = vmatpush.msra.mxu3 %v1939_v38  ;;  %v910_v38 = vsub.f32 %v2008_v31, %v909_v37 }
 0x15d   : > { %777 = vmatpush.msra.mxu1 %v1960_v52  ;;  %808 = vmatpush.msra.mxu2 %v713_v58 }
 0x15e   : > { %493 = vmatmul.f32.vlgmr.msra.gmra.mxu0 %v492_v35  ;;  %649 = vmatmul.f32.vlgmr.msrb.gmra.mxu1 %v1992_v24 }
 0x15f   : > { %833 = vmatpush.msra.mxu3 %v1942_v41  ;;  %742 = vmatpush.msra.mxu0 %v1945_v42  ;;  %v911_v41 = vand.u32 4294901760, %v910_v38 }
 0x160   : > { %683 = vmatmul.f32.vlgmr.msrb.gmra.mxu2 %v492_v35  ;;  %894 = vmatpush.msrb.mxu1 %v893_v36 }
 0x161   : > { %812 = vmatpush.msra.mxu2 %v719_v60  ;;  %835 = vmatpush.msra.mxu3 %v1949_v45 }
 0x162   : > { %724 = vmatmul.f32.vlgmr.msrb.gmra.mxu3 %v1992_v24  ;;  %745 = vmatpush.msra.mxu0 %v1952_v46 }
 0x163   : > { %837 = vmatpush.msra.mxu3 %v1960_v52  ;;  %900 = vmatpush.msrb.mxu1 %v899_v40 }
 0x164   : > { %932 = vmatpush.msrb.mxu2 %v1984_v18  ;;  %748 = vmatpush.msra.mxu0 %v1963_v53 }
 0x165   : > { %906 = vmatpush.msrb.mxu1 %v905_v43  ;;  %961 = vmatpush.msrb.mxu3 %v1978_v10 }
 0x166   : > { %624 = vmatmul.f32.vlgmr.msrb.gmra.mxu0 %v1992_v24  ;;  %781 = vmatmul.f32.vlgmr.msra.gmra.mxu1 %v490_v29 }
 0x167   : > { %935 = vmatpush.msrb.mxu2 %v1990_v23  ;;  %751 = vmatpush.msra.mxu0 %v1970_v57 }
 0x168   : > { %814 = vmatmul.f32.vlgmr.msra.gmra.mxu2 %v1992_v24  ;;  %912 = vmatpush.msrb.mxu1 %v911_v41 }
 0x169   : > { %938 = vmatpush.msrb.mxu2 %v1998_v26  ;;  %963 = vmatpush.msrb.mxu3 %v1981_v17 }
 0x16a   : > { %839 = vmatmul.f32.vlgmr.msra.gmra.mxu3 %v1992_v24  ;;  %861 = vmatpush.msrb.mxu0 %v1978_v10 }
 0x16b   : > { %941 = vmatpush.msrb.mxu2 %v2008_v31  ;;  %965 = vmatpush.msrb.mxu3 %v1986_v20 }
 0x16c   : > { %1021 = vmatpush.msra.mxu1 %v1978_v10  ;;  %863 = vmatpush.msrb.mxu0 %v1981_v17 }
 0x16d   : > { %967 = vmatpush.msrb.mxu3 %v1995_v25 }
 0x16e   : > { %754 = vmatmul.f32.vlgmr.msra.gmra.mxu0 %v489_v27  ;;  %914 = vmatmul.f32.vlgmr.msrb.gmra.mxu1 %v1992_v24 }
 0x16f   : > { %1023 = vmatpush.msra.mxu1 %v1981_v17  ;;  %865 = vmatpush.msrb.mxu0 %v1986_v20 }
 0x170   : > { %944 = vmatmul.f32.vlgmr.msrb.gmra.mxu2 %v489_v27 }
 0x171   : > { %1025 = vmatpush.msra.mxu1 %v1986_v20  ;;  %867 = vmatpush.msrb.mxu0 %v1995_v25 }
 0x172   : > { %971 = vmatmul.f32.vlgmr.msrb.gmra.mxu3 %v490_v29 }
 0x173   : > { %990 = vmatpush.msra.mxu0 %v891_v11  ;;  %1027 = vmatpush.msra.mxu1 %v1995_v25 }
 0x175   : > { %994 = vmatpush.msra.mxu0 %v897_v28 }
 0x176   : > { %873 = vmatmul.f32.vlgmr.msrb.gmra.mxu0 %v492_v35  ;;  %1029 = vmatmul.f32.vlgmr.msra.gmra.mxu1 %v1992_v24 }
 0x177   : > { %998 = vmatpush.msra.mxu0 %v903_v32 }
 0x179   : > { %1002 = vmatpush.msra.mxu0 %v909_v37 }
 0x17e   : > { %1004 = vmatmul.f32.vlgmr.msra.gmra.mxu0 %v1992_v24 }
 0x1d3   : > { %v535_v42 = vpop.f32.mrf.mxu1 }
 0x1db   : > { %v494_v44 = vpop.f32.mrf.mxu0  ;;  %v565_v45 = vpop.f32.mrf.mxu2 }
 0x1dc   : > { %v536_v46 = vadd.f32 %v535_v42, %v494_v44  ;;  %v650_v49 = vpop.f32.mrf.mxu1 }
 0x1dd   : > { %v592_v47 = vpop.f32.mrf.mxu3 }
 0x1de   : > { %v566_v48 = vadd.f32 %v565_v45, %v536_v46 }
 0x1e0   : > { %v593_v50 = vadd.f32 %v592_v47, %v566_v48 }
 0x1e3   : > { %v625_v51 = vpop.f32.mrf.mxu0  ;;  %v684_v52 = vpop.f32.mrf.mxu2 }
 0x1e4   : > { %v626_v53 = vadd.f32 %v625_v51, %v593_v50  ;;  %v782_v56 = vpop.f32.mrf.mxu1 }
 0x1e5   : > { %v725_v54 = vpop.f32.mrf.mxu3 }
 0x1e6   : > { %v651_v55 = vadd.f32 %v650_v49, %v626_v53 }
 0x1e8   : > { %653 = vst.msk [vmem:[%s405_s10] sm:$0xff] %vm423_vm0, %v651_v55 }
 0x1e9   : > { %1622 = shalt.err (!%p1619_p9)
}
 0x1ea   : > { %1321 = dma.vmem_to_hbm [thread:$0]  (%p1874_p13), %s1058_s16, 128, %s1060_s15, %s1035_s18   ;;  %v726_v57 = vadd.f32 %v725_v54, %v684_v52 }
 0x1eb   : > { %v755_v58 = vpop.f32.mrf.mxu0  ;;  %v815_v59 = vpop.f32.mrf.mxu2  ;;  %s1069_s10 = scalar_lea.hbm %s2146_s7, %s2063_s19  ;;  %s1039_s11 = sand.u32 1, %s1812_s12  }
 0x1ec   : > { %v756_v60 = vadd.f32 %v755_v58, %v726_v57  ;;  %s412_s20 = scalar_lea.vmem [#allocation14], %s1922_s1  ;;  %s1073_s13 = sshll.u32 %s1069_s10, 4  ;;  %v915_v1 = vpop.f32.mrf.mxu1  ;;  %s1074_s13 = int_to_ptr.hbm [resolvable:$true] %s1073_s13 }
 0x1ed   : > { %v840_v62 = vpop.f32.mrf.mxu3  ;;  %s1071_s21 = sshll.u32 %s412_s20, 4  ;;  %s2089_s16 = scalar_lea.sflag [#allocation15], %s1039_s11  ;;  %s1072_s21 = int_to_ptr.vmem [resolvable:$true] %s1071_s21 }
 0x1ee   : > { %v783_v61 = vadd.f32 %v782_v56, %v756_v60  ;;  %s1637_s15 = sshra.s32 %s1074_s13, 4  ;;  %s1643_s26 = scalar_lea.hbm %s2146_s7, 16  ;;  %s1638_s15 = int_to_ptr.hbm [resolvable:$true] %s1637_s15 }
 0x1ef   : > { %s1639_s12 = scalar_lea.hbm %s1638_s15, 8  ;;  %p1644_p2 = scmp.lt.s32.totalorder %s1638_s15, %s2146_s7 }
 0x1f0   : > { %v816_v63 = vadd.f32 %v815_v59, %v783_v61  ;;  %p1640_p10 = scmp.ne.s32.totalorder %s1638_s15, %s1639_s12  ;;  %p1645_p6 = scmp.lt.s32.totalorder %s1643_s26, %s1639_s12 }
 0x1f2   : > { %v841_v0 = vadd.f32 %v840_v62, %v816_v63  ;;  %p1641_p11 = pnand %p1640_p10, %p1874_p13  ;;  %p1646_p1 = por %p1645_p6, %p1644_p2 }
 0x1f3   : > { %v874_v2 = vpop.f32.mrf.mxu0  ;;  %v945_v4 = vpop.f32.mrf.mxu2 }
 0x1f4   : > { %v916_v3 = vadd.f32 %v915_v1, %v874_v2  ;;  %843 = vst.msk [vmem:[%s412_s20] sm:$0xff] %vm423_vm0, %v841_v0  ;;  %p1642_p0 = pneg %p1641_p11 }
 0x1f6   : > { %p1647_p3 = pnand %p1646_p1, %p1642_p0 }
 0x1f8   : > { %1650 = shalt.err (!%p1647_p3)
}
 0x1f9   : > { %1322 = dma.vmem_to_hbm [thread:$0]  (%p1874_p13), %s1072_s21, 128, %s1074_s13, %s2089_s16   ;;  %v946_v5 = vadd.f32 %v945_v4, %v916_v3  ;;  %v972_v6 = vpop.f32.mrf.mxu3  ;;  %v1030_v10 = vpop.f32.mrf.mxu1 }
 0x1fa   : > { %s1083_s11 = scalar_lea.hbm %s2147_s8, %s2063_s19  ;;  %s419_s20 = scalar_lea.vmem [#allocation16], %s1922_s1 }
 0x1fb   : > { %v973_v7 = vadd.f32 %v972_v6, %v946_v5  ;;  %v1005_v8 = vpop.f32.mrf.mxu0  ;;  %s1085_s15 = sshll.u32 %s419_s20, 4  ;;  %s1087_s12 = sshll.u32 %s1083_s11, 4  ;;  %s1086_s15 = int_to_ptr.vmem [resolvable:$true] %s1085_s15  ;;  %s1088_s12 = int_to_ptr.hbm [resolvable:$true] %s1087_s12 }
 0x1fc   : > { %s1665_s21 = sshra.s32 %s1088_s12, 4  ;;  %s1671_s1 = scalar_lea.hbm %s2147_s8, 16  ;;  %s1666_s21 = int_to_ptr.hbm [resolvable:$true] %s1665_s21 }
 0x1fd   : > { %v1006_v9 = vadd.f32 %v1005_v8, %v973_v7  ;;  %s1667_s13 = scalar_lea.hbm %s1666_s21, 8  ;;  %p1672_p7 = scmp.lt.s32.totalorder %s1666_s21, %s2147_s8 }
 0x1fe   : > { %p1668_p4 = scmp.ne.s32.totalorder %s1666_s21, %s1667_s13  ;;  %p1673_p9 = scmp.lt.s32.totalorder %s1671_s1, %s1667_s13 }
 0x1ff   : > { %v1031_v12 = vadd.f32 %v1030_v10, %v1006_v9 }
 0x200   : > { %p1669_p12 = pnand %p1668_p4, %p1874_p13  ;;  %p1674_p10 = por %p1673_p9, %p1672_p7 }
 0x201   : > { %1033 = vst.msk [vmem:[%s419_s20] sm:$0xff] %vm423_vm0, %v1031_v12 }
 0x202   : > { %p1670_p8 = pneg %p1669_p12 }
 0x204   : > { %p1675_p11 = pnand %p1674_p10, %p1670_p8 }
 0x206   : > { %1678 = shalt.err (!%p1675_p11)
}
 0x207   : > { %1323 = dma.vmem_to_hbm [thread:$0]  (%p1874_p13), %s1086_s15, 128, %s1088_s12, %s2089_s16  }
 0x208 PF: > { %s1099_s23 = sand.u32 1, %s1721_s27   ;;  %p2159_p0 = scmp.ge.s32.totalorder %s1733_s30, 2 }
 0x209   : > { %s1100_s0 = scalar_lea.sflag [#allocation4], %s1099_s23 }
 0x20a   : > { %p1348_p2 = pnand %p2159_p0, %p1881_p5 }
 0x20c   : > { %p1349_p6 = pneg %p1348_p2 }
 0x20e   : > { %1712 = dma.done.wait (%p1349_p6), %s1100_s0, 128  }
 0x20f   : > { %1714 = vsyncadd (%p1349_p6), %s1100_s0, 4294967168  ;;  %s2160_s24 = sadd.s32 4294967294, %s1733_s30  }
 0x210   : > { %s1109_s10 = sand.u32 1, %s2160_s24  }
 0x211   : > { %s1110_s11 = scalar_lea.sflag [#allocation15], %s1109_s10 }
 0x212   : > { %1716 = dma.done.wait (%p1349_p6), %s1110_s11, 256  }
 0x213   : > { %1718 = vsyncadd (%p1349_p6), %s1110_s11, 4294967040  ;;  %p28_p13 = scmp.ge.s32.totalorder %s1854_s9, 4   ;;  %s2161_s27 = smov %s1725_s28 }
 0x214   : > { %s2162_s28 = smov %s1729_s29  ;;  %s2163_s29 = smov %s1866_s14 }
 0x215   : > { %s2164_s30 = smov %s1854_s9  ;;  %30 = sbr.rel (!%p28_p13) target bundleno = 13 (0xd), region = 142 }
 0x21a   :  { %1126 = vsyncpa [#allocation3], 1 }
 0x21b   :  { %1128 = vsyncpa [#allocation3 + $0x1], 1 }
 0x21c   :  { %1129 = vsyncpa [#allocation6], 1 }
 0x21d   :  { %1130 = vsyncpa [#allocation9], 1 }
 0x21e   :  { %1131 = vsyncpa [#allocation12], 1 }
 0x21f   :  { %1133 = vsyncpa [#allocation12 + $0x1], 1 }
 0x220   :  { %1134 = vsyncpa [#allocation4], 1 }
 0x221   :  { %1136 = vsyncpa [#allocation4 + $0x1], 1 }
 0x222   :  { %1137 = vsyncpa [#allocation15], 1 }
 0x223   :  { %1139 = vsyncpa [#allocation15 + $0x1], 1 }

</bundles_post_ra>
